<compile_context>
chip_gen: v7x
topology: tpu7x:2x2x1
jax: 0.10.0
libtpu: 0.0.40
codegen_flags: <defaults>
</compile_context>

<pallas_src>
import functools

import jax
import jax.numpy as jnp
import numpy as np
from jax import lax
from jax.experimental import pallas as pl
from jax.experimental.pallas import tpu as pltpu

_LANE = 128
_MAX_BLOCK_ROWS = 1024   # (1024,128) f32 tile = 512 KiB; x2 inputs x2 buffers = 2 MiB
_NUM_SHARDS = 2          # v7x: 2 TensorCores; harmless on v5e/v6e


def _cdiv(a, b):
    return (a + b - 1) // b


def _hard_dice_kernel(logits_ref, targets_ref, out_ref,
                      acc_match_ref, acc_denom_ref,
                      *, do_threshold, rows_valid, blocks_per_shard):
    c = pl.program_id(0)   # shard (parallel across TensorCores on v7x)
    i = pl.program_id(1)   # block within shard (reduction axis)

    @pl.when(i == 0)
    def _init():
        acc_match_ref[...] = jnp.zeros_like(acc_match_ref)
        acc_denom_ref[...] = jnp.zeros_like(acc_denom_ref)

    block_rows = logits_ref.shape[0]

    x = logits_ref[...].astype(jnp.float32)
    t = targets_ref[...].astype(jnp.float32)

    if do_threshold:
        pred = (x > 0.5).astype(jnp.float32)
    else:
        pred = x

    # Mask rows past the real data: covers (a) block padding at the array
    # boundary and (b) re-read blocks from shard over-coverage.  Masked rows
    # contribute exactly zero to every sum.
    g = c * blocks_per_shard + i                 # logical global block index
    row0 = g * block_rows
    row = lax.broadcasted_iota(jnp.int32, (block_rows, _LANE), 0)
    valid = (row0 + row) < rows_valid
    pred = jnp.where(valid, pred, 0.0)
    t = jnp.where(valid, t, 0.0)

    match = jnp.where(pred == t, pred, 0.0)      # intersection contributions
    denom = pred + t                             # pred.sum() + targets.sum()

    # Fold (block_rows, 128) -> (8, 128): in-register VPU adds, no XLU.
    r = block_rows // 8
    acc_match_ref[...] += jnp.sum(match.reshape(r, 8, _LANE), axis=0)
    acc_denom_ref[...] += jnp.sum(denom.reshape(r, 8, _LANE), axis=0)

    @pl.when(i == pl.num_programs(1) - 1)
    def _finalize():
        out_ref[0, 0] = acc_match_ref[...]
        out_ref[0, 1] = acc_denom_ref[...]


def hard_dice_loss(logits, targets, format=True):
    """Pallas TPU implementation of HardDiceLoss.forward. Returns a f32 scalar."""
    lf = logits.reshape(-1)
    tf = targets.reshape(-1)
    n = lf.size

    # Minimal lane-alignment pad; no-op (no HBM rewrite) when n % 128 == 0,
    # which is the common case for NCHW image tensors.
    n_p = _cdiv(n, _LANE) * _LANE
    if n_p != n:
        # Zero pad contributes 0 to all sums (0 == 0 -> pred=0, denom=0).
        lf = jnp.pad(lf, (0, n_p - n))
        tf = jnp.pad(tf, (0, n_p - n))
    rows = n_p // _LANE

    l2 = lf.reshape(rows, _LANE)   # free bitcast, native dtype kept
    t2 = tf.reshape(rows, _LANE)

    # Sublane granularity for packed sub-32-bit dtypes (f32:8, bf16:16, i8:32).
    def _gran(dt):
        isz = jnp.dtype(dt).itemsize
        return 8 * max(1, 4 // max(1, isz))
    gran = max(_gran(l2.dtype), _gran(t2.dtype))

    block_rows = min(_MAX_BLOCK_ROWS, _cdiv(rows, gran) * gran)
    total_blocks = _cdiv(rows, block_rows)
    bps = _cdiv(total_blocks, _NUM_SHARDS)       # blocks per shard

    def in_map(c, i):
        # Clamp so shard over-coverage re-reads an in-bounds block; its
        # contribution is zeroed by the in-kernel row mask.
        return (jnp.minimum(c * bps + i, total_blocks - 1), 0)

    kernel = functools.partial(
        _hard_dice_kernel,
        do_threshold=bool(format),
        rows_valid=rows,
        blocks_per_shard=bps,
    )

    partials = pl.pallas_call(
        kernel,
        out_shape=jax.ShapeDtypeStruct((_NUM_SHARDS, 2, 8, _LANE), jnp.float32),
        grid_spec=pltpu.PrefetchScalarGridSpec(
            num_scalar_prefetch=0,
            grid=(_NUM_SHARDS, bps),
            in_specs=[
                pl.BlockSpec((block_rows, _LANE), in_map),
                pl.BlockSpec((block_rows, _LANE), in_map),
            ],
            out_specs=pl.BlockSpec((1, 2, 8, _LANE), lambda c, i: (c, 0, 0, 0)),
            scratch_shapes=[
                pltpu.VMEM((8, _LANE), jnp.float32),   # match accumulator
                pltpu.VMEM((8, _LANE), jnp.float32),   # denom accumulator
            ],
        ),
        compiler_params=pltpu.CompilerParams(
            dimension_semantics=("parallel", "arbitrary")),
    )(l2, t2)

    # Single cross-lane reduction + dice arithmetic (tiny) done in JAX.
    inter = jnp.sum(partials[:, 0])
    denom = jnp.sum(partials[:, 1])
    smooth = 1.0
    dice = (smooth + 2.0 * inter) / (denom + smooth)
    # TODO(synk): the PyTorch `.to('cuda').requires_grad_(True)` line is dead
    # code (a device move of a detached copy); forward value is `loss` itself.
    return 1.0 - dice


def _reference(logits, targets, format=True):
    # pure-JAX reference of the PyTorch forward
    if format:
        pred = (logits > 0.5).astype(jnp.float32)
    else:
        pred = logits.astype(jnp.float32)
    targets = targets.astype(jnp.float32)
    smooth = 1.0
    inter = jnp.sum(jnp.where(pred == targets, pred, 0.0))
    dice = (smooth + inter * 2.0) / (jnp.sum(pred) + jnp.sum(targets) + smooth)
    return 1.0 - dice


if __name__ == "__main__":
    key = jax.random.PRNGKey(0)
    k1, k2 = jax.random.split(key)

    B, C, H, W = 2, 4, 16, 16  # NCHW, matching the PyTorch convention
    logits = jax.random.uniform(k1, (B, C, H, W), dtype=jnp.float32)
    targets = (jax.random.uniform(k2, (B, C, H, W)) > 0.5).astype(jnp.float32)

    loss = hard_dice_loss(logits, targets, format=True)
    loss = jax.block_until_ready(loss)
    ref = _reference(logits, targets, format=True)
    assert np.isclose(np.asarray(loss), np.asarray(ref), rtol=1e-5, atol=1e-6), (
        loss, ref)

    # format=False path (identical arrays -> exact float equality, deterministic)
    loss2 = jax.block_until_ready(hard_dice_loss(targets, targets, format=False))
    ref2 = _reference(targets, targets, format=False)
    assert np.isclose(np.asarray(loss2), np.asarray(ref2), rtol=1e-5, atol=1e-6), (
        loss2, ref2)

    print("KERNEL_OK")
</pallas_src>

<mosaic_0001>
module attributes {stable_mosaic.version = 11 : i64} {
  func.func @_hard_dice_kernel(%arg0: i32, %arg1: i32, %arg2: memref<16x128xf32, #tpu.memory_space<vmem>>, %arg3: memref<16x128xf32, #tpu.memory_space<vmem>>, %arg4: memref<1x2x8x128xf32, #tpu.memory_space<vmem>>, %arg5: memref<8x128xf32, #tpu.memory_space<vmem>>, %arg6: memref<8x128xf32, #tpu.memory_space<vmem>>) attributes {dimension_semantics = [#tpu.dimension_semantics<parallel>, #tpu.dimension_semantics<arbitrary>], iteration_bounds = array<i64: 2, 1>, scalar_prefetch = 0 : i64, scratch_operands = 2 : i64, tpu.core_type = #tpu.core_type<tc>, window_params = [{transform_indices = @transform_0, window_bounds = array<i64: 16, 128>}, {transform_indices = @transform_1, window_bounds = array<i64: 16, 128>}, {transform_indices = @transform_2, window_bounds = array<i64: 1, 2, 8, 128>}]} {
    %c0_i32 = arith.constant 0 : i32
    %0 = arith.cmpi eq, %arg1, %c0_i32 : i32
    %1 = arith.extui %0 : i1 to i32
    %c0_i32_0 = arith.constant 0 : i32
    %2 = arith.cmpi ne, %1, %c0_i32_0 : i32
    scf.if %2 {
      %cst_20 = arith.constant 0.000000e+00 : f32
      %38 = vector.broadcast %cst_20 : f32 to vector<8x128xf32>
      %c0_21 = arith.constant 0 : index
      %c0_22 = arith.constant 0 : index
      %39 = vector.load %arg5[%c0_21, %c0_22] : memref<8x128xf32, #tpu.memory_space<vmem>>, vector<8x128xf32>
      tpu.vector_store %arg5[%c0_21, %c0_22], %38 {strides = array<i32>} : memref<8x128xf32, #tpu.memory_space<vmem>>, vector<8x128xf32>,
      %cst_23 = arith.constant 0.000000e+00 : f32
      %40 = vector.broadcast %cst_23 : f32 to vector<8x128xf32>
      %c0_24 = arith.constant 0 : index
      %c0_25 = arith.constant 0 : index
      %41 = vector.load %arg6[%c0_24, %c0_25] : memref<8x128xf32, #tpu.memory_space<vmem>>, vector<8x128xf32>
      tpu.vector_store %arg6[%c0_24, %c0_25], %40 {strides = array<i32>} : memref<8x128xf32, #tpu.memory_space<vmem>>, vector<8x128xf32>,
    } else {
    }
    %c0 = arith.constant 0 : index
    %c0_1 = arith.constant 0 : index
    %3 = vector.load %arg2[%c0, %c0_1] : memref<16x128xf32, #tpu.memory_space<vmem>>, vector<16x128xf32>
    %c0_2 = arith.constant 0 : index
    %c0_3 = arith.constant 0 : index
    %4 = vector.load %arg3[%c0_2, %c0_3] : memref<16x128xf32, #tpu.memory_space<vmem>>, vector<16x128xf32>
    %cst = arith.constant 5.000000e-01 : f32
    %5 = vector.broadcast %cst : f32 to vector<16x128xf32>
    %6 = arith.cmpf ogt, %3, %5 : vector<16x128xf32>
    %7 = arith.extui %6 : vector<16x128xi1> to vector<16x128xi32>
    %8 = arith.sitofp %7 : vector<16x128xi32> to vector<16x128xf32>
    %c1_i32 = arith.constant 1 : i32
    %9 = arith.muli %arg0, %c1_i32 : i32
    %10 = arith.addi %9, %arg1 : i32
    %c16_i32 = arith.constant 16 : i32
    %11 = arith.muli %10, %c16_i32 : i32
    %12 = tpu.iota {dimensions = array<i32: 0>} : vector<16x128xi32>
    %13 = vector.broadcast %11 : i32 to vector<16x128xi32>
    %14 = arith.addi %13, %12 : vector<16x128xi32>
    %c16_i32_4 = arith.constant 16 : i32
    %15 = vector.broadcast %c16_i32_4 : i32 to vector<16x128xi32>
    %16 = arith.cmpi slt, %14, %15 : vector<16x128xi32>
    %cst_5 = arith.constant 0.000000e+00 : f32
    %17 = vector.broadcast %cst_5 : f32 to vector<16x128xf32>
    %18 = arith.select %16, %8, %17 : vector<16x128xi1>, vector<16x128xf32>
    %cst_6 = arith.constant 0.000000e+00 : f32
    %19 = vector.broadcast %cst_6 : f32 to vector<16x128xf32>
    %20 = arith.select %16, %4, %19 : vector<16x128xi1>, vector<16x128xf32>
    %21 = arith.cmpf oeq, %18, %20 : vector<16x128xf32>
    %cst_7 = arith.constant 0.000000e+00 : f32
    %22 = vector.broadcast %cst_7 : f32 to vector<16x128xf32>
    %23 = arith.select %21, %18, %22 : vector<16x128xi1>, vector<16x128xf32>
    %24 = arith.addf %18, %20 : vector<16x128xf32>
    %c0_8 = arith.constant 0 : index
    %c0_9 = arith.constant 0 : index
    %25 = vector.load %arg5[%c0_8, %c0_9] : memref<8x128xf32, #tpu.memory_space<vmem>>, vector<8x128xf32>
    %26 = vector.shape_cast %23 : vector<16x128xf32> to vector<2x8x128xf32>
    %cst_10 = arith.constant dense<0.000000e+00> : vector<8x128xf32>
    %27 = vector.multi_reduction <add>, %26, %cst_10 [0] : vector<2x8x128xf32> to vector<8x128xf32>
    %28 = arith.addf %25, %27 : vector<8x128xf32>
    %c0_11 = arith.constant 0 : index
    %c0_12 = arith.constant 0 : index
    %29 = vector.load %arg5[%c0_11, %c0_12] : memref<8x128xf32, #tpu.memory_space<vmem>>, vector<8x128xf32>
    tpu.vector_store %arg5[%c0_11, %c0_12], %28 {strides = array<i32>} : memref<8x128xf32, #tpu.memory_space<vmem>>, vector<8x128xf32>,
    %c0_13 = arith.constant 0 : index
    %c0_14 = arith.constant 0 : index
    %30 = vector.load %arg6[%c0_13, %c0_14] : memref<8x128xf32, #tpu.memory_space<vmem>>, vector<8x128xf32>
    %31 = vector.shape_cast %24 : vector<16x128xf32> to vector<2x8x128xf32>
    %cst_15 = arith.constant dense<0.000000e+00> : vector<8x128xf32>
    %32 = vector.multi_reduction <add>, %31, %cst_15 [0] : vector<2x8x128xf32> to vector<8x128xf32>
    %33 = arith.addf %30, %32 : vector<8x128xf32>
    %c0_16 = arith.constant 0 : index
    %c0_17 = arith.constant 0 : index
    %34 = vector.load %arg6[%c0_16, %c0_17] : memref<8x128xf32, #tpu.memory_space<vmem>>, vector<8x128xf32>
    tpu.vector_store %arg6[%c0_16, %c0_17], %33 {strides = array<i32>} : memref<8x128xf32, #tpu.memory_space<vmem>>, vector<8x128xf32>,
    %c0_i32_18 = arith.constant 0 : i32
    %35 = arith.cmpi eq, %arg1, %c0_i32_18 : i32
    %36 = arith.extui %35 : i1 to i32
    %c0_i32_19 = arith.constant 0 : i32
    %37 = arith.cmpi ne, %36, %c0_i32_19 : i32
    scf.if %37 {
      %c0_20 = arith.constant 0 : index
      %c0_21 = arith.constant 0 : index
      %38 = vector.load %arg5[%c0_20, %c0_21] : memref<8x128xf32, #tpu.memory_space<vmem>>, vector<8x128xf32>
      %c0_22 = arith.constant 0 : index
      %c0_23 = arith.constant 0 : index
      %c0_24 = arith.constant 0 : index
      %c0_25 = arith.constant 0 : index
      %39 = vector.load %arg4[%c0_22, %c0_23, %c0_24, %c0_25] : memref<1x2x8x128xf32, #tpu.memory_space<vmem>>, vector<1x1x8x128xf32>
      %40 = vector.shape_cast %39 : vector<1x1x8x128xf32> to vector<8x128xf32>
      %41 = vector.shape_cast %38 : vector<8x128xf32> to vector<1x1x8x128xf32>
      tpu.vector_store %arg4[%c0_22, %c0_23, %c0_24, %c0_25], %41 {strides = array<i32>} : memref<1x2x8x128xf32, #tpu.memory_space<vmem>>, vector<1x1x8x128xf32>,
      %c0_26 = arith.constant 0 : index
      %c0_27 = arith.constant 0 : index
      %42 = vector.load %arg6[%c0_26, %c0_27] : memref<8x128xf32, #tpu.memory_space<vmem>>, vector<8x128xf32>
      %c0_28 = arith.constant 0 : index
      %c1 = arith.constant 1 : index
      %c0_29 = arith.constant 0 : index
      %c0_30 = arith.constant 0 : index
      %43 = vector.load %arg4[%c0_28, %c1, %c0_29, %c0_30] : memref<1x2x8x128xf32, #tpu.memory_space<vmem>>, vector<1x1x8x128xf32>
      %44 = vector.shape_cast %43 : vector<1x1x8x128xf32> to vector<8x128xf32>
      %45 = vector.shape_cast %42 : vector<8x128xf32> to vector<1x1x8x128xf32>
      tpu.vector_store %arg4[%c0_28, %c1, %c0_29, %c0_30], %45 {strides = array<i32>} : memref<1x2x8x128xf32, #tpu.memory_space<vmem>>, vector<1x1x8x128xf32>,
    } else {
    }
    return
  }
  func.func @transform_0(%arg0: i32, %arg1: i32) -> (i32, i32) {
    %c1_i32 = arith.constant 1 : i32
    %0 = arith.muli %arg0, %c1_i32 : i32
    %1 = arith.addi %0, %arg1 : i32
    %c0_i32 = arith.constant 0 : i32
    %2 = arith.minsi %1, %c0_i32 : i32
    %c0_i32_0 = arith.constant 0 : i32
    %c0_i32_1 = arith.constant 0 : i32
    return %2, %c0_i32_0 : i32, i32
  }
  func.func @transform_1(%arg0: i32, %arg1: i32) -> (i32, i32) {
    %c1_i32 = arith.constant 1 : i32
    %0 = arith.muli %arg0, %c1_i32 : i32
    %1 = arith.addi %0, %arg1 : i32
    %c0_i32 = arith.constant 0 : i32
    %2 = arith.minsi %1, %c0_i32 : i32
    %c0_i32_0 = arith.constant 0 : i32
    %c0_i32_1 = arith.constant 0 : i32
    return %2, %c0_i32_0 : i32, i32
  }
  func.func @transform_2(%arg0: i32, %arg1: i32) -> (i32, i32, i32, i32) {
    %c0_i32 = arith.constant 0 : i32
    %c0_i32_0 = arith.constant 0 : i32
    %c0_i32_1 = arith.constant 0 : i32
    %c0_i32_2 = arith.constant 0 : i32
    return %arg0, %c0_i32, %c0_i32_0, %c0_i32_1 : i32, i32, i32, i32
  }
}

</mosaic_0001>

<bundles_post_ra>
// kernel: tpu_custom_call.1
= control target key start
LH: loop header
LB: loop body
LE: loop exit
PB: predicated region body
PF: predicated region fallthrough
CT: control target
= control target key end

     0   :  { %7 = vsyncpa [#allocation5], 0  ;;  %s937_s0 = inlined_call_operand.hbm [shape: f32[16,128], index: 0, kind: input, shape index: {}]   ;;  %s938_s1 = inlined_call_operand.hbm [shape: f32[16,128], index: 1, kind: input, shape index: {}]   ;;  %s939_s2 = inlined_call_operand.hbm [shape: f32[2,2,8,128], index: 2, kind: output, shape index: {}]  }
   0x1   :  { %9 = vsyncpa [#allocation5 + $0x1], 0 }
   0x2   :  { %10 = vsyncpa [#allocation8], 0 }
   0x3   :  { %12 = vsyncpa [#allocation8 + $0x1], 0 }
   0x4   :  { %13 = vsyncpa [#allocation6], 0 }
   0x5   :  { %15 = vsyncpa [#allocation6 + $0x1], 0  ;;  %s724_s9 = smov 0   ;;  %s726_s10 = smov 0  }
   0x6   :  { %s728_s11 = smov 0   ;;  %s730_s12 = smov 0  }
   0x7   :  { %s732_s13 = smov 0   ;;  %s734_s14 = smov 0  }
   0x8   :  { %s736_s15 = smov 0   ;;  %s738_s16 = smov 0  }
   0x9 LB: > { %s410_s17 = sadd.s32 4294967295, %s699_s16   ;;  %s411_s18 = sadd.s32 4294967294, %s699_s16   ;;  %s699_s16 = sphi %s738_s16, %s21_s16   ;;  %s695_s15 = sphi %s736_s15, %s958_s15   ;;  %s691_s14 = sphi %s734_s14, %s957_s14   ;;  %s687_s13 = sphi %s732_s13, %s927_s13   ;;  %s683_s12 = sphi %s730_s12, %s956_s12   ;;  %s679_s11 = sphi %s728_s11, %s955_s11   ;;  %s675_s10 = sphi %s726_s10, %s954_s10   ;;  %s671_s9 = sphi %s724_s9, %s953_s9  }
   0xa   : > { %s33_s19 = sadd.s32 1, %s695_s15  ;;  %p668_p1 = scmp.ne.s32.totalorder %s687_s13, 0 }
   0xb   : > { %p35_p0 = scmp.ge.s32.totalorder %s33_s19, 2  ;;  %p54_p2 = scmp.eq.s32.totalorder %s699_s16, 0 }
   0xc   : > { %p59_p3 = scmp.ne.s32.totalorder %s687_s13, %s683_s12  ;;  %p60_p5 = scmp.eq.s32.totalorder %s410_s17, 0 }
   0xd   : > { %s960_s19 = smov (%p35_p0, %s33_s19), 0  ;;  %p770_p4 = por %p668_p1, %p54_p2 }
   0xe   : > { %p774_p6 = por %p60_p5, %p59_p3  ;;  %s101_s22 = ssub.s32 %s695_s15, %s960_s19 }
   0xf   : > { %p102_p7 = scmp.eq.s32.totalorder %s101_s22, 0  ;;  %s104_s23 = sadd.s32 1, %s679_s11 }
  0x10   : > { %s943_s21 = scalar_select %p774_p6, 1, 0 }
  0x11   : > { %s782_s24 = scalar_select %p102_p7, %s679_s11, %s104_s23  }
  0x12   : > { %p114_p8 = scmp.ne.s32.totalorder %s679_s11, %s675_s10  ;;  %p115_p9 = scmp.eq.s32.totalorder %s410_s17, 1 }
  0x13   : > { %p120_p10 = scmp.ne.s32.totalorder %s675_s10, %s671_s9  ;;  %p121_p11 = scmp.eq.s32.totalorder %s411_s18, 1 }
  0x14   : > { %p788_p12 = por %p115_p9, %p114_p8  ;;  %p453_p1 = scmp.lt.s32.totalorder %s699_s16, 2 }
  0x15   : > { %p793_p0 = por %p121_p11, %p120_p10  ;;  %s701_s27 = smov [#allocation4]  }
  0x16   : > { %s944_s25 = scalar_select %p788_p12, 1, 0 }
  0x17   : > { %s945_s26 = scalar_select %p793_p0, 1, 0 }
  0x18   : > { %s155_s28 = sshll.u32 %s701_s27, 4  ;;  %p800_p2 = pnand %p453_p1, %p770_p4  ;;  %s156_s28 = int_to_ptr.vmem [resolvable:$true] %s155_s28 }
  0x19   : > { %s532_s4 = scalar_lea.hbm %s937_s0, 256 }
  0x1a   : > { %p533_p3 = scmp.ne.s32.totalorder %s937_s0, %s532_s4  ;;  %p534_p5 = pneg %p800_p2 }
  0x1b   : > { %p539_p8 = scmp.lt.u32.totalorder %s532_s4, %s532_s4  ;;  %p541_p9 = scmp.lt.u32.totalorder %s532_s4, %s937_s0 }
  0x1c   : > { %p535_p7 = pnand %p534_p5, %p533_p3 }
  0x1d   : > { %p542_p10 = por %p541_p9, %p539_p8 }
  0x1e   : > { %p536_p4 = pneg %p535_p7 }
  0x20   : > { %p543_p11 = pnand %p542_p10, %p536_p4 }
  0x22   : > { %546 = shalt.err (!%p543_p11)
}
  0x23   : > { %s547_s12 = scalar_lea.vmem %s156_s28, 256  ;;  %s554_s17 = scalar_lea.vmem %s156_s28, 512 }
  0x24   : > { %p548_p1 = scmp.ne.s32.totalorder %s156_s28, %s547_s12  ;;  %p555_p12 = scmp.lt.s32.totalorder %s156_s28, %s156_s28 }
  0x25   : > { %p556_p6 = scmp.lt.s32.totalorder %s554_s17, %s547_s12 }
  0x26   : > { %p550_p13 = pnand %p548_p1, %p534_p5 }
  0x27   : > { %p557_p3 = por %p556_p6, %p555_p12 }
  0x28   : > { %p551_p0 = pneg %p550_p13 }
  0x2a   : > { %p558_p7 = pnand %p557_p3, %p551_p0 }
  0x2c   : > { %561 = shalt.err (!%p558_p7)
}
  0x2d   : > { %s702_s18 = smov 128   ;;  %s703_s20 = smov 8  }
  0x2e   : > { %445 = dma.hbm_to_vmem [thread:$0]  (!%p800_p2), %s937_s0, 256, %s156_s28, [#allocation5], %s702_s18, %s702_s18, %s703_s20  }
  0x2f   : > { %p420_p13 = scmp.ge.s32.totalorder %s699_s16, 1  ;;  %p187_p4 = scmp.lt.s32.totalorder %s699_s16, 3 }
  0x30   : > { %s704_s30 = smov [#allocation7]   ;;  %s562_s6 = scalar_lea.hbm %s938_s1, 256 }
  0x31   : > { %p831_p8 = pnand %p420_p13, %p187_p4  ;;  %s179_s3 = sshll.u32 %s704_s30, 4  ;;  %s180_s3 = int_to_ptr.vmem [resolvable:$true] %s179_s3 }
  0x32   : > { %p563_p6 = scmp.ne.s32.totalorder %s938_s1, %s562_s6  ;;  %p569_p9 = scmp.lt.u32.totalorder %s562_s6, %s562_s6 }
  0x33   : > { %s947_s27 = scalar_select %p831_p8, 1, 0 }
  0x34   : > { %p565_p12 = pnand %p563_p6, %p534_p5  ;;  %p571_p10 = scmp.lt.u32.totalorder %s562_s6, %s938_s1 }
  0x36   : > { %p566_p0 = pneg %p565_p12  ;;  %p572_p11 = por %p571_p10, %p569_p9 }
  0x38   : > { %p573_p1 = pnand %p572_p11, %p566_p0 }
  0x3a   : > { %576 = shalt.err (!%p573_p1)
}
  0x3b   : > { %s577_s17 = scalar_lea.vmem %s180_s3, 256  ;;  %s584_s22 = scalar_lea.vmem %s180_s3, 512 }
  0x3c   : > { %p578_p3 = scmp.ne.s32.totalorder %s180_s3, %s577_s17  ;;  %p585_p4 = scmp.lt.s32.totalorder %s180_s3, %s180_s3 }
  0x3d   : > { %p586_p8 = scmp.lt.s32.totalorder %s584_s22, %s577_s17 }
  0x3e   : > { %p580_p7 = pnand %p578_p3, %p534_p5 }
  0x3f   : > { %p587_p6 = por %p586_p8, %p585_p4 }
  0x40   : > { %p581_p13 = pneg %p580_p7 }
  0x42   : > { %p588_p12 = pnand %p587_p6, %p581_p13 }
  0x44   : > { %591 = shalt.err (!%p588_p12)
}
  0x45   : > { %448 = dma.hbm_to_vmem [thread:$0]  (!%p800_p2), %s938_s1, 256, %s180_s3, [#allocation8], %s702_s18, %s702_s18, %s703_s20  }
  0x46   : > { %p948_p0 = scmp.ne.s32.totalorder %s947_s27, 0 }
  0x47   : > { %s193_s4 = sand.u32 (!%p948_p0), 1, %s687_s13   ;;  %p949_p5 = scmp.ne.s32.totalorder (!%p948_p0), %s943_s21, 0 }
  0x48   : > { %191 = sbr.rel (%p948_p0) target bundleno = 111 (0x6f), region = 28  ;;  %s421_s5 = sshll.u32 (!%p948_p0), %s193_s4, 4 }
  0x49   : > { %s194_s6 = scalar_lea.sflag (!%p948_p0), [#allocation5], %s193_s4  ;;  %s197_s7 = scalar_lea.vmem (!%p948_p0), [#allocation4], %s421_s5 }
  0x4f   : > { %657 = dma.done.wait (%p949_p5), %s194_s6, 256  }
  0x50   : > { %659 = vsyncadd (%p949_p5), %s194_s6, 4294967040  ;;  %s203_s29 = scalar_lea.sflag [#allocation8], %s193_s4  ;;  %s206_s8 = scalar_lea.vmem [#allocation7], %s421_s5 }
  0x51   : > { %661 = dma.done.wait (%p949_p5), %s203_s29, 256  }
  0x52   : > { %663 = vsyncadd (%p949_p5), %s203_s29, 4294967040  ;;  %s229_s18 = sand.u32 1, %s675_s10   ;;  %s426_s20 = sshll.u32 %s691_s14, 4  ;;  %v258_v0 = vlaneseq  ;;  %v246_v6 = vld [vmem:[%s197_s7] sm:$0xff]  ;;  %v247_v7 = vld [vmem:[%s197_s7 + $0x8] sm:$0xff]  ;;  %v705_v11 = vmov 0.0  }
  0x53   : > { %v261_v1 = vstv %s426_s20  ;;  %s423_s27 = sshll.u32 %s229_s18, 4  ;;  %v248_v8 = vld [vmem:[%s206_s8] sm:$0xff]  ;;  %v249_v9 = vld [vmem:[%s206_s8 + $0x8] sm:$0xff]  ;;  %vm250_vm1 = vcmp.gt.f32.partialorder %v246_v6, 0.5  ;;  %vm251_vm2 = vcmp.gt.f32.partialorder %v247_v7, 0.5  ;;  %s435_s28 = sshll.u32 %s691_s14, 8 }
  0x54   : > { %v259_v2 = vshrl.u32 %v258_v0, 7  ;;  %v424_v12 = vsel %vm250_vm1, 1.0, %v705_v11  ;;  %v425_v13 = vsel %vm251_vm2, 1.0, %v705_v11  ;;  %s231_s21 = scalar_lea.vmem [#allocation9], %s423_s27  ;;  %s881_s22 = scalar_lea.hbm %s939_s2, %s435_s28 }
  0x55   : > { %s306_s3 = sshll.u32 %s231_s21, 4  ;;  %s885_s14 = scalar_lea.sflag [#allocation6], %s229_s18  ;;  %s876_s3 = int_to_ptr.vmem [resolvable:$true] %s306_s3 }
  0x56   : > { %v260_v3 = vadd.s32 8, %v259_v2  ;;  %v262_v4 = vadd.s32 %v261_v1, %v259_v2  ;;  %s592_s23 = scalar_lea.vmem %s876_s3, 256  ;;  %p950_p8 = scmp.ne.s32.totalorder %s944_s25, 0 }
  0x57   : > { %p593_p2 = scmp.ne.s32.totalorder %s876_s3, %s592_s23  ;;  %s706_s30 = smov [#allocation9]  }
  0x58   : > { %v263_v5 = vadd.s32 %v261_v1, %v260_v3  ;;  %vm264_vm0 = vcmp.lt.s32.totalorder %v262_v4, 16  ;;  %s596_s4 = sshll.u32 %s706_s30, 4  ;;  %s597_s4 = int_to_ptr.vmem [resolvable:$false] %s596_s4 }
  0x59   : > { %v268_v10 = vsel %vm264_vm0, %v248_v8, 0.0  ;;  %v266_v15 = vsel %vm264_vm0, %v424_v12, 0.0  ;;  %p594_p9 = pnand %p593_p2, %p950_p8  ;;  %s598_s5 = scalar_lea.vmem %s597_s4, 512 }
  0x5a   : > { %vm265_vm3 = vcmp.lt.s32.totalorder %v263_v5, 16  ;;  %vm270_vm4 = vcmp.eq.f32.partialorder %v266_v15, %v268_v10  ;;  %v274_v17 = vadd.f32 %v268_v10, %v266_v15  ;;  %p599_p11 = scmp.lt.s32.totalorder %s876_s3, %s597_s4  ;;  %p600_p1 = scmp.lt.s32.totalorder %s598_s5, %s592_s23 }
  0x5b   : > { %v269_v14 = vsel %vm265_vm3, %v249_v9, 0.0  ;;  %v267_v16 = vsel %vm265_vm3, %v425_v13, 0.0  ;;  %v272_v19 = vsel %vm270_vm4, %v266_v15, 0.0  ;;  %p595_p10 = pneg %p594_p9 }
  0x5c   : > { %vm271_vm5 = vcmp.eq.f32.partialorder %v267_v16, %v269_v14  ;;  %v275_v18 = vadd.f32 %v269_v14, %v267_v16  ;;  %p601_p3 = por %p600_p1, %p599_p11 }
  0x5d   : > { %v273_v20 = vsel %vm271_vm5, %v267_v16, 0.0 }
  0x5e   : > { %v277_v21 = vadd.f32 %v273_v20, %v272_v19  ;;  %v281_v22 = vadd.f32 %v275_v18, %v274_v17  ;;  %p602_p7 = pnand %p601_p3, %p595_p10 }
  0x60   : > { %288 = vst [vmem:[%s231_s21] sm:$0xff] %v277_v21  ;;  %427 = vst [vmem:[%s231_s21 + $0x8] sm:$0xff] %v281_v22 }
  0x61   : > { %605 = shalt.err (!%p602_p7)
}
  0x62   : > { %s606_s6 = scalar_lea.hbm %s881_s22, 256  ;;  %s610_s8 = scalar_lea.hbm %s939_s2, 512 }
  0x63   : > { %p607_p13 = scmp.ne.s32.totalorder %s881_s22, %s606_s6  ;;  %p611_p12 = scmp.lt.u32.totalorder %s881_s22, %s939_s2 }
  0x64   : > { %p612_p0 = scmp.lt.u32.totalorder %s610_s8, %s606_s6  ;;  %p614_p2 = scmp.lt.u32.totalorder %s606_s6, %s881_s22 }
  0x65   : > { %p608_p4 = pnand %p607_p13, %p950_p8 }
  0x66   : > { %p613_p5 = por %p612_p0, %p611_p12 }
  0x67   : > { %p609_p6 = pneg %p608_p4 }
  0x68   : > { %p615_p9 = por %p614_p2, %p613_p5 }
  0x6a   : > { %p616_p10 = pnand %p615_p9, %p609_p6 }
  0x6c   : > { %619 = shalt.err (!%p616_p10)
}
  0x6d   : > { %s707_s27 = smov 128   ;;  %s708_s21 = smov 8  }
  0x6e   : > { %440 = dma.vmem_to_hbm [thread:$0]  (%p950_p8), %s876_s3, 256, %s881_s22, %s885_s14, %s707_s27, %s707_s27, %s708_s21  }
  0x6f PF: > { %s321_s28 = sand.u32 1, %s671_s9   ;;  %p951_p11 = scmp.ne.s32.totalorder %s945_s26, 0 }
  0x70   : > { %p952_p1 = scmp.ge.s32.totalorder %s699_s16, 2  ;;  %s322_s12 = scalar_lea.sflag [#allocation6], %s321_s28 }
  0x72   : > { %p450_p3 = pnand %p952_p1, %p951_p11 }
  0x74   : > { %665 = dma.done.wait (!%p450_p3), %s322_s12, 256  }
  0x75   : > { %667 = vsyncadd (!%p450_p3), %s322_s12, 4294967040  ;;  %s21_s16 = sadd.s32 1, %s699_s16   ;;  %s953_s9 = smov %s675_s10 }
  0x76   : > { %p18_p7 = scmp.ge.s32.totalorder %s21_s16, 4   ;;  %s954_s10 = smov %s679_s11 }
  0x77   : > { %s955_s11 = smov %s782_s24  ;;  %s956_s12 = smov %s687_s13 }
  0x78   : > { %s927_s13 = smov 0   ;;  %s957_s14 = smov %s695_s15 }
  0x79   : > { %s958_s15 = smov %s960_s19  ;;  %20 = sbr.rel (!%p18_p7) target bundleno = 9 (0x9), region = 95 }
  0x80   :  { %327 = vsyncpa [#allocation5], 1 }
  0x81   :  { %329 = vsyncpa [#allocation5 + $0x1], 1 }
  0x82   :  { %330 = vsyncpa [#allocation8], 1 }
  0x83   :  { %332 = vsyncpa [#allocation8 + $0x1], 1 }
  0x84   :  { %333 = vsyncpa [#allocation6], 1 }
  0x85   :  { %335 = vsyncpa [#allocation6 + $0x1], 1 }

</bundles_post_ra>
